<compile_context>
chip_gen: v7x
topology: tpu7x:2x2x1
jax: 0.10.0
libtpu: 0.0.40
codegen_flags: <defaults>
</compile_context>

<pallas_src>
import jax
import jax.numpy as jnp
from jax.experimental import pallas as pl
from jax.experimental.pallas import tpu as pltpu

BN_EPS = 1e-5
DIMS = (32, 128, 64, 32, 1)  # input_dim -> 128 -> 64 -> 32 -> 1
_LANE = 128


def _leaky_relu(x, slope=0.01):
    return jnp.where(x >= 0, x, slope * x)


def _round_up(n, m):
    return ((n + m - 1) // m) * m


# ---------------------------------------------------------------------------
# Kernel (batch-in-lanes layout)
# ---------------------------------------------------------------------------
def icr_probe_kernel(x_ref,
                     w1_ref, b1_ref,
                     w2_ref, b2_ref,
                     w3_ref, b3_ref,
                     w4_ref, b4_ref,
                     o_ref):
    """One batch tile.

    x_ref : [32, bt]  f32   (features on sublanes, batch on lanes)
    wN_ref: [out, in] bf16  (BN folded in)       bN_ref: [out, 1] f32
    w4_ref: [32, 1]   f32                         b4_ref: [1, 1]  f32
    o_ref : [1, bt]   f32   (lane-dense output row)
    """
    mm = w1_ref.dtype  # bf16 matmul operands; f32 accumulation on the MXU

    # Layer 1: (128,32) @ (32,bt) -> (128,bt), bias + LeakyReLU.  Dropout = id (eval).
    h = jnp.dot(w1_ref[...], x_ref[...].astype(mm),
                preferred_element_type=jnp.float32)
    h = _leaky_relu(h + b1_ref[...])

    # Layer 2: (64,128) @ (128,bt) -> (64,bt)   (fully lane-dense activations)
    h = jnp.dot(w2_ref[...], h.astype(mm), preferred_element_type=jnp.float32)
    h = _leaky_relu(h + b2_ref[...])

    # Layer 3: (32,64) @ (64,bt) -> (32,bt)
    h = jnp.dot(w3_ref[...], h.astype(mm), preferred_element_type=jnp.float32)
    h = _leaky_relu(h + b3_ref[...])

    # Layer 4 (32 -> 1): VPU multiply + sublane-axis reduction over the 32 feature
    # rows (4 f32 vregs per lane group) -- no cross-lane XLU reduce, no N=1 matmul.
    logits = jnp.sum(h * w4_ref[...], axis=0, keepdims=True) + b4_ref[...]  # [1, bt]

    # Numerically-stable sigmoid on a lane-dense [1, bt] row (exp on the EUP).
    z = jnp.exp(-jnp.abs(logits))
    numer = jnp.where(logits >= 0, 1.0, z)
    o_ref[...] = (numer / (1.0 + z)).astype(o_ref.dtype)


# ---------------------------------------------------------------------------
# Wrapper
# ---------------------------------------------------------------------------
def _pick_tile(B, batch_tile):
    bt_cap = max(_LANE, (batch_tile // _LANE) * _LANE)
    bp_min = _round_up(B, _LANE)
    bt = min(bt_cap, bp_min)
    # v7x megacore: keep >= 2 grid steps whenever there is enough work so that
    # dimension_semantics=("parallel",) can actually shard across both TensorCores.
    if bp_min // bt < 2 and bp_min >= 2 * _LANE:
        bt = _round_up((bp_min + 1) // 2, _LANE)
    # Avoid a pad copy of x when a reasonably-large divisor tile exists.
    if B % bt != 0:
        for cand in range(bt, _LANE - 1, -_LANE):
            if B % cand == 0 and cand * 4 >= bt:
                bt = cand
                break
    return bt, _round_up(B, bt)


def icr_probe_forward(x_fm, kparams, *, batch_tile=4096):
    """Fused eval-mode forward of ICRProbe.

    x_fm: [input_dim, B] float32, feature-major (i.e. x.T of the PyTorch layout).
          Producers should emit this layout directly so no extra HBM transpose
          pass is needed.
    kparams: output of fold_params() (BN folded into the Linear layers).
    Returns [B, 1] float32 probabilities.
    """
    D, B = x_fm.shape
    assert D == DIMS[0]

    bt, Bp = _pick_tile(B, batch_tile)
    if Bp != B:
        # TODO(synk): handle the ragged tail in-kernel (masked boundary block) instead
        # of materializing a padded copy of x for awkward batch sizes.
        x_fm = jnp.pad(x_fm, ((0, 0), (0, Bp - B)))
    grid = (Bp // bt,)

    # Tiny (~13 KiB) parameter set stays resident in VMEM every step (constant index).
    param_specs = [pl.BlockSpec(p.shape, lambda i: (0, 0)) for p in kparams]
    in_specs = [pl.BlockSpec((D, bt), lambda i: (0, i))] + param_specs
    out_spec = pl.BlockSpec((1, bt), lambda i: (0, i))

    flops = 2 * Bp * sum(a * b for a, b in zip(DIMS[:-1], DIMS[1:]))
    param_bytes = sum(int(p.size) * p.dtype.itemsize for p in kparams)
    cost = pl.CostEstimate(
        flops=int(flops),
        transcendentals=int(Bp),
        bytes_accessed=int(Bp * D * 4 + Bp * 4 + param_bytes),
    )

    out = pl.pallas_call(
        icr_probe_kernel,
        out_shape=jax.ShapeDtypeStruct((1, Bp), jnp.float32),
        grid_spec=pltpu.PrefetchScalarGridSpec(
            num_scalar_prefetch=0,
            grid=grid,
            in_specs=in_specs,
            out_specs=out_spec,
        ),
        compiler_params=pltpu.CompilerParams(
            dimension_semantics=("parallel",),
        ),
        cost_estimate=cost,
    )(x_fm, *kparams)

    # (1, Bp) row-major and (Bp, 1) share the same memory layout: free reshape.
    return out.reshape(Bp, 1)[:B]


# ---------------------------------------------------------------------------
# Parameters: raw (PyTorch-equivalent) init + BN folding for the kernel
# ---------------------------------------------------------------------------
def init_raw_params(key, input_dim=32):
    """Matches the PyTorch module's _init_weights in eval mode:
    kaiming_uniform_(a=0.01, leaky_relu) Linear weights, zero biases,
    BN gamma=1, beta=0, running_mean=0, running_var=1."""
    dims = (input_dim,) + DIMS[1:]
    keys = jax.random.split(key, 4)
    raw = []
    for li, (fan_in, fan_out) in enumerate(zip(dims[:-1], dims[1:])):
        a = 0.01
        gain = (2.0 / (1.0 + a * a)) ** 0.5
        bound = gain * (3.0 / fan_in) ** 0.5
        # stored as [in, out] (transpose of PyTorch's [out, in]); reference uses x @ W
        w = jax.random.uniform(keys[li], (fan_in, fan_out), jnp.float32,
                               minval=-bound, maxval=bound)
        b = jnp.zeros((fan_out,), jnp.float32)
        if li < 3:
            gamma = jnp.ones((fan_out,), jnp.float32)
            beta = jnp.zeros((fan_out,), jnp.float32)
            mean = jnp.zeros((fan_out,), jnp.float32)
            var = jnp.ones((fan_out,), jnp.float32)
            raw.append((w, b, gamma, beta, mean, var))
        else:
            raw.append((w, b))
    return raw


def fold_params(raw, matmul_dtype=jnp.bfloat16):
    """Fold eval-mode BatchNorm into the Linear layers and lay the weights out as
    [out, in] for the batch-in-lanes kernel:
       scale = gamma / sqrt(var + eps); W' = W*scale; b' = b*scale + (beta - mean*scale).
    Matmul weights cast to `matmul_dtype`; biases / last layer stay f32."""
    kparams = []
    for li, layer in enumerate(raw):
        if li < 3:
            w, b, gamma, beta, mean, var = layer
            scale = gamma / jnp.sqrt(var + BN_EPS)                       # [out]
            shift = beta - mean * scale                                  # [out]
            w_t = (w * scale[None, :]).T.astype(matmul_dtype)            # [out, in]
            b_col = (b * scale + shift).reshape(-1, 1).astype(jnp.float32)  # [out, 1]
            kparams.extend([w_t, b_col])
        else:
            w, b = layer                                                 # [32, 1], [1]
            kparams.extend([w.astype(jnp.float32),                       # [32, 1] column
                            b.reshape(1, 1).astype(jnp.float32)])        # [1, 1]
    return tuple(kparams)


def reference_forward(x, raw):
    """Plain-JAX f32 reference of the eval-mode PyTorch forward (x: [B, D])."""
    h = x
    for (w, b, gamma, beta, mean, var) in raw[:3]:
        h = h @ w + b
        h = (h - mean) / jnp.sqrt(var + BN_EPS) * gamma + beta
        h = _leaky_relu(h)
    w4, b4 = raw[3]
    return jax.nn.sigmoid(h @ w4 + b4)


# ---------------------------------------------------------------------------
if __name__ == "__main__":
    key = jax.random.PRNGKey(0)
    k_x1, k_x2, k_p = jax.random.split(key, 3)

    D = 32
    raw = init_raw_params(k_p, input_dim=D)
    kparams = fold_params(raw, matmul_dtype=jnp.bfloat16)

    # Case 1: B=512 -> two 256-wide tiles (exercises the >=2-step megacore path).
    B1 = 512
    x1 = jax.random.normal(k_x1, (B1, D), jnp.float32)          # PyTorch-layout input
    out1 = jax.block_until_ready(icr_probe_forward(jnp.transpose(x1), kparams))
    ref1 = reference_forward(x1, raw)
    assert out1.shape == (B1, 1)
    assert bool(jnp.all(jnp.isfinite(out1)))
    assert jnp.allclose(out1, ref1, atol=2e-2, rtol=2e-2), float(
        jnp.max(jnp.abs(out1 - ref1)))

    # Case 2: small, non-multiple batch exercises the padding path (single tile).
    B2 = 100
    x2 = jax.random.normal(k_x2, (B2, D), jnp.float32)
    out2 = jax.block_until_ready(icr_probe_forward(jnp.transpose(x2), kparams))
    ref2 = reference_forward(x2, raw)
    assert out2.shape == (B2, 1)
    assert bool(jnp.all(jnp.isfinite(out2)))
    assert jnp.allclose(out2, ref2, atol=2e-2, rtol=2e-2), float(
        jnp.max(jnp.abs(out2 - ref2)))

    print("KERNEL_OK")
</pallas_src>

<mosaic_0001>
module attributes {stable_mosaic.version = 11 : i64} {
  func.func @icr_probe_kernel(%arg0: i32, %arg1: memref<32x256xf32, #tpu.memory_space<vmem>>, %arg2: memref<128x32xbf16, #tpu.memory_space<vmem>>, %arg3: memref<128x1xf32, #tpu.memory_space<vmem>>, %arg4: memref<64x128xbf16, #tpu.memory_space<vmem>>, %arg5: memref<64x1xf32, #tpu.memory_space<vmem>>, %arg6: memref<32x64xbf16, #tpu.memory_space<vmem>>, %arg7: memref<32x1xf32, #tpu.memory_space<vmem>>, %arg8: memref<32x1xf32, #tpu.memory_space<vmem>>, %arg9: memref<1x1xf32, #tpu.memory_space<vmem>>, %arg10: memref<1x256xf32, #tpu.memory_space<vmem>>) attributes {dimension_semantics = [#tpu.dimension_semantics<parallel>], iteration_bounds = array<i64: 2>, scalar_prefetch = 0 : i64, scratch_operands = 0 : i64, tpu.core_type = #tpu.core_type<tc>, window_params = [{transform_indices = @transform_0, window_bounds = array<i64: 32, 256>}, {pipeline_mode = #tpu.pipeline_mode<synchronous>, transform_indices = @transform_1, window_bounds = array<i64: 128, 32>}, {pipeline_mode = #tpu.pipeline_mode<synchronous>, transform_indices = @transform_2, window_bounds = array<i64: 128, 1>}, {pipeline_mode = #tpu.pipeline_mode<synchronous>, transform_indices = @transform_3, window_bounds = array<i64: 64, 128>}, {pipeline_mode = #tpu.pipeline_mode<synchronous>, transform_indices = @transform_4, window_bounds = array<i64: 64, 1>}, {pipeline_mode = #tpu.pipeline_mode<synchronous>, transform_indices = @transform_5, window_bounds = array<i64: 32, 64>}, {pipeline_mode = #tpu.pipeline_mode<synchronous>, transform_indices = @transform_6, window_bounds = array<i64: 32, 1>}, {pipeline_mode = #tpu.pipeline_mode<synchronous>, transform_indices = @transform_7, window_bounds = array<i64: 32, 1>}, {pipeline_mode = #tpu.pipeline_mode<synchronous>, transform_indices = @transform_8, window_bounds = array<i64: 1, 1>}, {transform_indices = @transform_9, window_bounds = array<i64: 1, 256>}]} {
    %c0 = arith.constant 0 : index
    %c0_0 = arith.constant 0 : index
    %0 = vector.load %arg2[%c0, %c0_0] : memref<128x32xbf16, #tpu.memory_space<vmem>>, vector<128x32xbf16>
    %c0_1 = arith.constant 0 : index
    %c0_2 = arith.constant 0 : index
    %1 = vector.load %arg1[%c0_1, %c0_2] : memref<32x256xf32, #tpu.memory_space<vmem>>, vector<32x256xf32>
    %2 = arith.truncf %1 : vector<32x256xf32> to vector<32x256xbf16>
    %cst = arith.constant dense<0.000000e+00> : vector<128x256xf32>
    %3 = tpu.matmul %0, %2, %cst {dimension_numbers = #tpu.dot_dimension_numbers<[1], [0], [0], [1], [0, 0, 1, 1], [], []>} : vector<128x32xbf16>, vector<32x256xbf16>, vector<128x256xf32> -> vector<128x256xf32>
    %c0_3 = arith.constant 0 : index
    %c0_4 = arith.constant 0 : index
    %4 = vector.load %arg3[%c0_3, %c0_4] : memref<128x1xf32, #tpu.memory_space<vmem>>, vector<128x1xf32>
    %5 = vector.broadcast %4 : vector<128x1xf32> to vector<128x256xf32>
    %6 = arith.addf %3, %5 : vector<128x256xf32>
    %cst_5 = arith.constant 0.000000e+00 : f32
    %7 = vector.broadcast %cst_5 : f32 to vector<128x256xf32>
    %8 = arith.cmpf oge, %6, %7 : vector<128x256xf32>
    %cst_6 = arith.constant 0.00999999977 : f32
    %9 = vector.broadcast %cst_6 : f32 to vector<128x256xf32>
    %10 = arith.mulf %9, %6 : vector<128x256xf32>
    %11 = arith.select %8, %6, %10 : vector<128x256xi1>, vector<128x256xf32>
    %c0_7 = arith.constant 0 : index
    %c0_8 = arith.constant 0 : index
    %12 = vector.load %arg4[%c0_7, %c0_8] : memref<64x128xbf16, #tpu.memory_space<vmem>>, vector<64x128xbf16>
    %13 = arith.truncf %11 : vector<128x256xf32> to vector<128x256xbf16>
    %cst_9 = arith.constant dense<0.000000e+00> : vector<64x256xf32>
    %14 = tpu.matmul %12, %13, %cst_9 {dimension_numbers = #tpu.dot_dimension_numbers<[1], [0], [0], [1], [0, 0, 1, 1], [], []>} : vector<64x128xbf16>, vector<128x256xbf16>, vector<64x256xf32> -> vector<64x256xf32>
    %c0_10 = arith.constant 0 : index
    %c0_11 = arith.constant 0 : index
    %15 = vector.load %arg5[%c0_10, %c0_11] : memref<64x1xf32, #tpu.memory_space<vmem>>, vector<64x1xf32>
    %16 = vector.broadcast %15 : vector<64x1xf32> to vector<64x256xf32>
    %17 = arith.addf %14, %16 : vector<64x256xf32>
    %cst_12 = arith.constant 0.000000e+00 : f32
    %18 = vector.broadcast %cst_12 : f32 to vector<64x256xf32>
    %19 = arith.cmpf oge, %17, %18 : vector<64x256xf32>
    %cst_13 = arith.constant 0.00999999977 : f32
    %20 = vector.broadcast %cst_13 : f32 to vector<64x256xf32>
    %21 = arith.mulf %20, %17 : vector<64x256xf32>
    %22 = arith.select %19, %17, %21 : vector<64x256xi1>, vector<64x256xf32>
    %c0_14 = arith.constant 0 : index
    %c0_15 = arith.constant 0 : index
    %23 = vector.load %arg6[%c0_14, %c0_15] : memref<32x64xbf16, #tpu.memory_space<vmem>>, vector<32x64xbf16>
    %24 = arith.truncf %22 : vector<64x256xf32> to vector<64x256xbf16>
    %cst_16 = arith.constant dense<0.000000e+00> : vector<32x256xf32>
    %25 = tpu.matmul %23, %24, %cst_16 {dimension_numbers = #tpu.dot_dimension_numbers<[1], [0], [0], [1], [0, 0, 1, 1], [], []>} : vector<32x64xbf16>, vector<64x256xbf16>, vector<32x256xf32> -> vector<32x256xf32>
    %c0_17 = arith.constant 0 : index
    %c0_18 = arith.constant 0 : index
    %26 = vector.load %arg7[%c0_17, %c0_18] : memref<32x1xf32, #tpu.memory_space<vmem>>, vector<32x1xf32>
    %27 = vector.broadcast %26 : vector<32x1xf32> to vector<32x256xf32>
    %28 = arith.addf %25, %27 : vector<32x256xf32>
    %cst_19 = arith.constant 0.000000e+00 : f32
    %29 = vector.broadcast %cst_19 : f32 to vector<32x256xf32>
    %30 = arith.cmpf oge, %28, %29 : vector<32x256xf32>
    %cst_20 = arith.constant 0.00999999977 : f32
    %31 = vector.broadcast %cst_20 : f32 to vector<32x256xf32>
    %32 = arith.mulf %31, %28 : vector<32x256xf32>
    %33 = arith.select %30, %28, %32 : vector<32x256xi1>, vector<32x256xf32>
    %c0_21 = arith.constant 0 : index
    %c0_22 = arith.constant 0 : index
    %34 = vector.load %arg8[%c0_21, %c0_22] : memref<32x1xf32, #tpu.memory_space<vmem>>, vector<32x1xf32>
    %35 = vector.broadcast %34 : vector<32x1xf32> to vector<32x256xf32>
    %36 = arith.mulf %33, %35 : vector<32x256xf32>
    %cst_23 = arith.constant dense<0.000000e+00> : vector<256xf32>
    %37 = vector.multi_reduction <add>, %36, %cst_23 [0] : vector<32x256xf32> to vector<256xf32>
    %38 = vector.shape_cast %37 : vector<256xf32> to vector<1x256xf32>
    %c0_24 = arith.constant 0 : index
    %c0_25 = arith.constant 0 : index
    %39 = vector.load %arg9[%c0_24, %c0_25] : memref<1x1xf32, #tpu.memory_space<vmem>>, vector<1x1xf32>
    %40 = vector.broadcast %39 : vector<1x1xf32> to vector<1x256xf32>
    %41 = arith.addf %38, %40 : vector<1x256xf32>
    %42 = math.absf %41 : vector<1x256xf32>
    %cst_26 = arith.constant 0.000000e+00 : f32
    %43 = vector.broadcast %cst_26 : f32 to vector<1x256xf32>
    %44 = arith.subf %43, %42 : vector<1x256xf32>
    %45 = math.exp %44 : vector<1x256xf32>
    %cst_27 = arith.constant 0.000000e+00 : f32
    %46 = vector.broadcast %cst_27 : f32 to vector<1x256xf32>
    %47 = arith.cmpf oge, %41, %46 : vector<1x256xf32>
    %cst_28 = arith.constant 1.000000e+00 : f32
    %48 = vector.broadcast %cst_28 : f32 to vector<1x256xf32>
    %49 = arith.select %47, %48, %45 : vector<1x256xi1>, vector<1x256xf32>
    %cst_29 = arith.constant 1.000000e+00 : f32
    %50 = vector.broadcast %cst_29 : f32 to vector<1x256xf32>
    %51 = arith.addf %50, %45 : vector<1x256xf32>
    %52 = arith.divf %49, %51 : vector<1x256xf32>
    %c0_30 = arith.constant 0 : index
    %c0_31 = arith.constant 0 : index
    %53 = vector.load %arg10[%c0_30, %c0_31] : memref<1x256xf32, #tpu.memory_space<vmem>>, vector<1x256xf32>
    tpu.vector_store %arg10[%c0_30, %c0_31], %52 {strides = array<i32>} : memref<1x256xf32, #tpu.memory_space<vmem>>, vector<1x256xf32>,
    return
  }
  func.func @transform_0(%arg0: i32) -> (i32, i32) {
    %c0_i32 = arith.constant 0 : i32
    %c0_i32_0 = arith.constant 0 : i32
    return %c0_i32, %arg0 : i32, i32
  }
  func.func @transform_1(%arg0: i32) -> (i32, i32) {
    %c0_i32 = arith.constant 0 : i32
    %c0_i32_0 = arith.constant 0 : i32
    %c0_i32_1 = arith.constant 0 : i32
    return %c0_i32, %c0_i32_0 : i32, i32
  }
  func.func @transform_2(%arg0: i32) -> (i32, i32) {
    %c0_i32 = arith.constant 0 : i32
    %c0_i32_0 = arith.constant 0 : i32
    %c0_i32_1 = arith.constant 0 : i32
    return %c0_i32, %c0_i32_0 : i32, i32
  }
  func.func @transform_3(%arg0: i32) -> (i32, i32) {
    %c0_i32 = arith.constant 0 : i32
    %c0_i32_0 = arith.constant 0 : i32
    %c0_i32_1 = arith.constant 0 : i32
    return %c0_i32, %c0_i32_0 : i32, i32
  }
  func.func @transform_4(%arg0: i32) -> (i32, i32) {
    %c0_i32 = arith.constant 0 : i32
    %c0_i32_0 = arith.constant 0 : i32
    %c0_i32_1 = arith.constant 0 : i32
    return %c0_i32, %c0_i32_0 : i32, i32
  }
  func.func @transform_5(%arg0: i32) -> (i32, i32) {
    %c0_i32 = arith.constant 0 : i32
    %c0_i32_0 = arith.constant 0 : i32
    %c0_i32_1 = arith.constant 0 : i32
    return %c0_i32, %c0_i32_0 : i32, i32
  }
  func.func @transform_6(%arg0: i32) -> (i32, i32) {
    %c0_i32 = arith.constant 0 : i32
    %c0_i32_0 = arith.constant 0 : i32
    %c0_i32_1 = arith.constant 0 : i32
    return %c0_i32, %c0_i32_0 : i32, i32
  }
  func.func @transform_7(%arg0: i32) -> (i32, i32) {
    %c0_i32 = arith.constant 0 : i32
    %c0_i32_0 = arith.constant 0 : i32
    %c0_i32_1 = arith.constant 0 : i32
    return %c0_i32, %c0_i32_0 : i32, i32
  }
  func.func @transform_8(%arg0: i32) -> (i32, i32) {
    %c0_i32 = arith.constant 0 : i32
    %c0_i32_0 = arith.constant 0 : i32
    %c0_i32_1 = arith.constant 0 : i32
    return %c0_i32, %c0_i32_0 : i32, i32
  }
  func.func @transform_9(%arg0: i32) -> (i32, i32) {
    %c0_i32 = arith.constant 0 : i32
    %c0_i32_0 = arith.constant 0 : i32
    return %c0_i32, %arg0 : i32, i32
  }
}

</mosaic_0001>

<bundles_post_ra>
// kernel: tpu_custom_call.1
= control target key start
LH: loop header
LB: loop body
LE: loop exit
PB: predicated region body
PF: predicated region fallthrough
CT: control target
= control target key end

     0   :  { %s1795_s0 = inlined_call_operand.vmem [shape: f32[32,512], index: 0, kind: input, shape index: {}]   ;;  %s1796_s1 = inlined_call_operand.vmem [shape: bf16[128,32], index: 1, kind: input, shape index: {}]   ;;  %s1797_s2 = inlined_call_operand.vmem [shape: f32[128,1], index: 2, kind: input, shape index: {}]   ;;  %s1798_s3 = inlined_call_operand.vmem [shape: bf16[64,128], index: 3, kind: input, shape index: {}]   ;;  %s1799_s4 = inlined_call_operand.vmem [shape: f32[64,1], index: 4, kind: input, shape index: {}]   ;;  %s1800_s5 = inlined_call_operand.vmem [shape: bf16[32,64], index: 5, kind: input, shape index: {}]   ;;  %s1801_s6 = inlined_call_operand.vmem [shape: f32[32,1], index: 6, kind: input, shape index: {}]   ;;  %s1802_s7 = inlined_call_operand.vmem [shape: f32[32,1], index: 7, kind: input, shape index: {}]   ;;  %s1803_s8 = inlined_call_operand.<no memory space> [shape: f32[1,1], index: 8, kind: input, shape index: {}]   ;;  %s1804_s9 = inlined_call_operand.hbm [shape: f32[1,512], index: 9, kind: output, shape index: {}]  }
   0x1   :  { %v14_v0 = vstv %s1803_s8 }
   0x2   :  { %15 = vst [vmem:[#allocation2] sm:$0x1] %v14_v0 }
   0x3   :  { %16 = vsyncpa [#allocation5], 0 }
   0x4   :  { %18 = vsyncpa [#allocation5 + $0x1], 0  ;;  %s1523_s11 = smov 0   ;;  %s1525_s12 = smov 0  }
   0x5   :  { %s1527_s13 = smov 0   ;;  %s1529_s14 = smov 0  }
   0x6 LB: > { %s1297_s8 = sadd.s32 4294967295, %s1465_s14   ;;  %s1298_s15 = sadd.s32 4294967294, %s1465_s14   ;;  %s1465_s14 = sphi %s1529_s14, %s1810_s14   ;;  %s1461_s13 = sphi %s1527_s13, %s1809_s13   ;;  %s1457_s12 = sphi %s1525_s12, %s1808_s12   ;;  %s1453_s11 = sphi %s1523_s11, %s1807_s11  }
   0x7   : > { %s1546_s16 = sadd.s32 1, %s1465_s14   ;;  %s31_s17 = sadd.s32 1, %s1461_s13 }
   0x8   : > { %s28_s18 = ssub.s32 %s1465_s14, %s1546_s16  ;;  %p38_p0 = scmp.ne.s32.totalorder %s1461_s13, %s1457_s12 }
   0x9   : > { %p29_p1 = scmp.eq.s32.totalorder %s28_s18, 0  ;;  %p39_p2 = scmp.eq.s32.totalorder %s1465_s14, 0 }
   0xa   : > { %p236_p3 = scmp.eq.s32.totalorder %s1297_s8, 1  ;;  %p241_p4 = scmp.ne.s32.totalorder %s1457_s12, %s1453_s11 }
   0xb   : > { %s1559_s19 = scalar_select %p29_p1, %s1461_s13, %s31_s17  }
   0xc   : > { %p40_p5 = por %p39_p2, %p38_p0  ;;  %p1561_p6 = por %p236_p3, %p38_p0 }
   0xd   : > { %p242_p7 = scmp.eq.s32.totalorder %s1298_s15, 1  ;;  %p1300_p9 = scmp.ge.s32.totalorder %s1465_s14, 2 }
   0xf   : > { %p1565_p8 = por %p242_p7, %p241_p4  ;;  %282 = sbr.rel (%p1300_p9) target bundleno = 30 (0x1e), region = 48 }
  0x16   : > { %285 = sbr.rel (!%p40_p5) target bundleno = 30 (0x1e), region = 52  ;;  %s287_s22 = sand.u32 (%p40_p5), 1, %s1461_s13  }
  0x17   : > { %s1336_s23 = sshll.u32 (%p40_p5), %s1465_s14, 4  ;;  %s1301_s24 = sshll.u32 (%p40_p5), %s287_s22, 6 }
  0x18   : > { %s292_s27 = scalar_lea.vmem (%p40_p5), %s1795_s0, %s1336_s23  ;;  %s289_s28 = scalar_lea.vmem (%p40_p5), [#allocation3], %s1301_s24 }
  0x19   : > { %v305_v1 = vld [vmem:[%s292_s27] sm:$0xff] (%p40_p5)  ;;  %v307_v2 = vld [vmem:[%s292_s27 + $0x8] sm:$0xff] (%p40_p5) }
  0x1a   : > { %v309_v3 = vld [vmem:[%s292_s27 + $0x20] sm:$0xff] (%p40_p5)  ;;  %306 = vst [vmem:[%s289_s28] sm:$0xff] (%p40_p5), %v305_v1  ;;  %308 = vst [vmem:[%s289_s28 + $0x8] sm:$0xff] (%p40_p5), %v307_v2  ;;  %v311_v4 = vld [vmem:[%s292_s27 + $0x28] sm:$0xff] (%p40_p5) }
  0x1b   : > { %310 = vst [vmem:[%s289_s28 + $0x10] sm:$0xff] (%p40_p5), %v309_v3  ;;  %v313_v5 = vld [vmem:[%s292_s27 + $0x40] sm:$0xff] (%p40_p5)  ;;  %v315_v6 = vld [vmem:[%s292_s27 + $0x48] sm:$0xff] (%p40_p5)  ;;  %312 = vst [vmem:[%s289_s28 + $0x18] sm:$0xff] (%p40_p5), %v311_v4 }
  0x1c   : > { %314 = vst [vmem:[%s289_s28 + $0x20] sm:$0xff] (%p40_p5), %v313_v5  ;;  %316 = vst [vmem:[%s289_s28 + $0x28] sm:$0xff] (%p40_p5), %v315_v6  ;;  %v317_v7 = vld [vmem:[%s292_s27 + $0x60] sm:$0xff] (%p40_p5)  ;;  %v319_v8 = vld [vmem:[%s292_s27 + $0x68] sm:$0xff] (%p40_p5) }
  0x1d   : > { %318 = vst [vmem:[%s289_s28 + $0x30] sm:$0xff] %v317_v7  ;;  %320 = vst [vmem:[%s289_s28 + $0x38] sm:$0xff] %v319_v8 }
  0x1e PF: > { %p1304_p10 = scmp.ge.s32.totalorder %s1465_s14, 1  ;;  %p325_p11 = scmp.lt.s32.totalorder %s1465_s14, 3 }
  0x20   : > { %p326_p12 = pnand %p1304_p10, %p325_p11 }
  0x21   : > { %s1580_s29 = sand.u32 (!%p326_p12), 1, %s1457_s12   ;;  %v1467_v9 = vmov (!%p326_p12), 0   ;;  %v398_v22 = vld [vmem:[%s1797_s2] sm:$0xff] (!%p326_p12)  ;;  %v400_v24 = vld [vmem:[%s1797_s2 + $0x10] sm:$0xff] (!%p326_p12)  ;;  %vm534_vm0 = vcmask (!%p326_p12), 261120   ;;  %v399_v25 = vld [vmem:[%s1797_s2 + $0x8] sm:$0xff] (!%p326_p12) }
  0x22   : > { %329 = sbr.rel (%p326_p12) target bundleno = 877 (0x36d), region = 75  ;;  %s1305_s30 = sshll.u32 (!%p326_p12), %s1580_s29, 6  ;;  %591 = vmatprep.mubr.bf16.mxu0 (!%p326_p12), %v1467_v9  ;;  %1379 = vset.pattern.permute.xlu0 (!%p326_p12), %v1467_v9  ;;  %v1381_v23 = vld [vmem:[%s1796_s1] sm:$0xff] (!%p326_p12)   ;;  %v401_v26 = vld [vmem:[%s1797_s2 + $0x18] sm:$0xff] (!%p326_p12)  ;;  %v403_v28 = vld [vmem:[%s1797_s2 + $0x28] sm:$0xff] (!%p326_p12) }
  0x23   : > { %1380 = vset.pattern.permute.xlu1 (!%p326_p12), %v1467_v9  ;;  %896 = vmatprep.mubr.bf16.mxu1 (!%p326_p12), %v1467_v9  ;;  %s334_s10 = scalar_lea.vmem (!%p326_p12), [#allocation3], %s1305_s30  ;;  %v402_v27 = vld [vmem:[%s1797_s2 + $0x20] sm:$0xff] (!%p326_p12)  ;;  %v1382_v29 = vld [vmem:[%s1796_s1 + $0x8] sm:$0xff] (!%p326_p12)   ;;  %v404_v30 = vld [vmem:[%s1797_s2 + $0x30] sm:$0xff] (!%p326_p12)  ;;  %s1306_s27 = sshll.u32 (!%p326_p12), %s1580_s29, 1 }
  0x24   : > { %v387_v10 = vld [vmem:[%s334_s10 + $0x8] sm:$0xff] (!%p326_p12)  ;;  %v389_v11 = vld [vmem:[%s334_s10 + $0x18] sm:$0xff] (!%p326_p12)  ;;  %v386_v12 = vld [vmem:[%s334_s10] sm:$0xff] (!%p326_p12)  ;;  %416 = vperm.xlu0 (!%p326_p12), %1379, %v398_v22   ;;  %426 = vperm.xlu1 (!%p326_p12), %1380, %v400_v24   ;;  %s1337_s28 = sshll.u32 (!%p326_p12), %s1297_s8, 5  ;;  %s366_s30 = scalar_lea.vmem (!%p326_p12), [#allocation4], %s1306_s27 }
  0x25   : > { %v395_v13 = vpack.c.bf16 (!%p326_p12), %v389_v11, %v387_v10  ;;  %v388_v14 = vld [vmem:[%s334_s10 + $0x10] sm:$0xff] (!%p326_p12)  ;;  %v391_v15 = vld [vmem:[%s334_s10 + $0x28] sm:$0xff] (!%p326_p12)  ;;  %v393_v16 = vld [vmem:[%s334_s10 + $0x38] sm:$0xff] (!%p326_p12)  ;;  %s1751_s18 = scalar_lea.hbm (!%p326_p12), %s1804_s9, %s1337_s28  ;;  %s1219_s22 = scalar_lea.sflag (!%p326_p12), [#allocation5], %s1580_s29 }
  0x26   : > { %v394_v17 = vpack.c.bf16 (!%p326_p12), %v388_v14, %v386_v12  ;;  %v397_v18 = vpack.c.bf16 (!%p326_p12), %v393_v16, %v391_v15  ;;  %v390_v19 = vld [vmem:[%s334_s10 + $0x20] sm:$0xff] (!%p326_p12)  ;;  %v392_v20 = vld [vmem:[%s334_s10 + $0x30] sm:$0xff] (!%p326_p12)  ;;  %v1165_v62 = vld [vmem:[#allocation2] sm:$0x1] (!%p326_p12)  ;;  %s1233_s10 = sshll.u32 (!%p326_p12), %s366_s30, 4  ;;  %s1469_s8 = smov (!%p326_p12), [#allocation4]   ;;  %s1753_s10 = int_to_ptr.vmem [resolvable:$true] %s1233_s10 }
  0x27   : > { %559 = vmatprep.subr.bf16.mxu0 (!%p326_p12), %v395_v13  ;;  %v396_v21 = vpack.c.bf16 (!%p326_p12), %v392_v20, %v390_v19  ;;  %v405_v31 = vld [vmem:[%s1797_s2 + $0x38] sm:$0xff] (!%p326_p12)  ;;  %v406_v32 = vld [vmem:[%s1797_s2 + $0x40] sm:$0xff] (!%p326_p12)  ;;  %v407_v33 = vld [vmem:[%s1797_s2 + $0x48] sm:$0xff] (!%p326_p12)  ;;  %s1403_s23 = scalar_lea.vmem (!%p326_p12), %s1753_s10, 32  ;;  %s1407_s24 = sshll.u32 (!%p326_p12), %s1469_s8, 4  ;;  %s1408_s24 = int_to_ptr.vmem [resolvable:$false] %s1407_s24 }
  0x28   : > { %560 = vmatpush1.bf16.msra.mxu0 (!%p326_p12), %v394_v17  ;;  %421 = vperm.xlu0 (!%p326_p12), %1379, %v399_v25   ;;  %v1383_v34 = vld [vmem:[%s1796_s1 + $0x10] sm:$0xff] (!%p326_p12)   ;;  %v409_v36 = vld [vmem:[%s1797_s2 + $0x58] sm:$0xff] (!%p326_p12)  ;;  %v410_v37 = vld [vmem:[%s1797_s2 + $0x60] sm:$0xff] (!%p326_p12)  ;;  %p1404_p13 = scmp.ne.s32.totalorder (!%p326_p12), %s1753_s10, %s1403_s23  ;;  %s1409_s25 = scalar_lea.vmem (!%p326_p12), %s1408_s24, 64 }
  0x29   : > { %561 = vmatprep.subr.bf16.mxu0 %v397_v18  ;;  %431 = vperm.xlu1 %1380, %v401_v26   ;;  %v408_v35 = vld [vmem:[%s1797_s2 + $0x50] sm:$0xff]  ;;  %v411_v38 = vld [vmem:[%s1797_s2 + $0x68] sm:$0xff]  ;;  %v1384_v39 = vld [vmem:[%s1796_s1 + $0x18] sm:$0xff]   ;;  %p1410_p2 = scmp.lt.s32.totalorder %s1753_s10, %s1408_s24  ;;  %p1411_p3 = scmp.lt.s32.totalorder %s1409_s25, %s1403_s23 }
  0x2a   : > { %v412_v40 = vld [vmem:[%s1797_s2 + $0x70] sm:$0xff]  ;;  %v413_v41 = vld [vmem:[%s1797_s2 + $0x78] sm:$0xff]  ;;  %v792_v42 = vld [vmem:[%s1799_s4] sm:$0xff]  ;;  %p1405_p0 = pnand %p1404_p13, %p1561_p6 }
  0x2b   : > { %v793_v43 = vld [vmem:[%s1799_s4 + $0x8] sm:$0xff]  ;;  %v1385_v44 = vld [vmem:[%s1796_s1 + $0x20] sm:$0xff]   ;;  %v794_v45 = vld [vmem:[%s1799_s4 + $0x10] sm:$0xff]  ;;  %p1412_p4 = por %p1411_p3, %p1410_p2 }
  0x2c   : > { %562 = vmatpush1.bf16.msra.mxu0 %v396_v21  ;;  %436 = vperm.xlu0 %1379, %v402_v27   ;;  %v795_v46 = vld [vmem:[%s1799_s4 + $0x18] sm:$0xff]  ;;  %v796_v47 = vld [vmem:[%s1799_s4 + $0x20] sm:$0xff]  ;;  %v797_v48 = vld [vmem:[%s1799_s4 + $0x28] sm:$0xff]  ;;  %p1406_p1 = pneg %p1405_p0 }
  0x2d   : > { %441 = vperm.xlu1 %1380, %v403_v28   ;;  %v1386_v49 = vld [vmem:[%s1796_s1 + $0x28] sm:$0xff]   ;;  %v798_v50 = vld [vmem:[%s1799_s4 + $0x30] sm:$0xff]  ;;  %v799_v51 = vld [vmem:[%s1799_s4 + $0x38] sm:$0xff] }
  0x2e   : > { %v997_v52 = vld [vmem:[%s1801_s6] sm:$0xff]  ;;  %v998_v53 = vld [vmem:[%s1801_s6 + $0x8] sm:$0xff]  ;;  %v1387_v54 = vld [vmem:[%s1796_s1 + $0x30] sm:$0xff]   ;;  %p1413_p5 = pnand %p1412_p4, %p1406_p1 }
  0x2f   : > { %1315 = vmatmul.mubr.msk.bf16.vlgmr.msra.gmra.mrb[0].mxu0 %vm534_vm0, %v1381_v23  ;;  %v999_v55 = vld [vmem:[%s1801_s6 + $0x10] sm:$0xff]  ;;  %v1000_v56 = vld [vmem:[%s1801_s6 + $0x18] sm:$0xff]  ;;  %v1115_v57 = vld [vmem:[%s1802_s7] sm:$0xff] }
  0x30   : > { %601 = vmatprep.mubr.bf16.mxu0 %v1467_v9  ;;  %446 = vperm.xlu0 %1379, %v404_v30   ;;  %v1116_v58 = vld [vmem:[%s1802_s7 + $0x8] sm:$0xff]  ;;  %v1388_v59 = vld [vmem:[%s1796_s1 + $0x38] sm:$0xff]   ;;  %v1117_v60 = vld [vmem:[%s1802_s7 + $0x10] sm:$0xff] }
  0x31   : > { %451 = vperm.xlu1 %1380, %v405_v31   ;;  %v1118_v61 = vld [vmem:[%s1802_s7 + $0x18] sm:$0xff] }
  0x34   : > { %456 = vperm.xlu0 %1379, %v406_v32  }
  0x35   : > { %461 = vperm.xlu1 %1380, %v407_v33  }
  0x37   : > { %1316 = vmatmul.mubr.msk.bf16.gmra.mrb[4].mxu0 %vm534_vm0, %v1382_v29 }
  0x38   : > { %611 = vmatprep.mubr.bf16.mxu0 %v1467_v9  ;;  %466 = vperm.xlu0 %1379, %v408_v35  }
  0x39   : > { %471 = vperm.xlu1 %1380, %v409_v36  }
  0x3c   : > { %476 = vperm.xlu0 %1379, %v410_v37  }
  0x3d   : > { %481 = vperm.xlu1 %1380, %v411_v38  }
  0x3f   : > { %1317 = vmatmul.mubr.msk.bf16.gmra.mrb[8].mxu0 %vm534_vm0, %v1383_v34 }
  0x40   : > { %621 = vmatprep.mubr.bf16.mxu0 %v1467_v9  ;;  %486 = vperm.xlu0 %1379, %v412_v40  }
  0x41   : > { %491 = vperm.xlu1 %1380, %v413_v41  }
  0x44   : > { %802 = vperm.xlu0 %1379, %v792_v42  }
  0x45   : > { %807 = vperm.xlu1 %1380, %v793_v43  }
  0x47   : > { %1318 = vmatmul.mubr.msk.bf16.gmra.mrb[12].mxu0 %vm534_vm0, %v1384_v39 }
  0x48   : > { %631 = vmatprep.mubr.bf16.mxu0 %v1467_v9  ;;  %812 = vperm.xlu0 %1379, %v794_v45  }
  0x49   : > { %817 = vperm.xlu1 %1380, %v795_v46  }
  0x4c   : > { %822 = vperm.xlu0 %1379, %v796_v47  }
  0x4d   : > { %827 = vperm.xlu1 %1380, %v797_v48  }
  0x4f   : > { %1319 = vmatmul.mubr.msk.bf16.gmra.mrb[16].mxu0 %vm534_vm0, %v1385_v44 }
  0x50   : > { %641 = vmatprep.mubr.bf16.mxu0 %v1467_v9  ;;  %832 = vperm.xlu0 %1379, %v798_v50  }
  0x51   : > { %837 = vperm.xlu1 %1380, %v799_v51  }
  0x54   : > { %1003 = vperm.xlu0 %1379, %v997_v52  }
  0x55   : > { %1008 = vperm.xlu1 %1380, %v998_v53  }
  0x57   : > { %1320 = vmatmul.mubr.msk.bf16.gmra.mrb[20].mxu0 %vm534_vm0, %v1386_v49 }
  0x58   : > { %651 = vmatprep.mubr.bf16.mxu0 %v1467_v9  ;;  %1013 = vperm.xlu0 %1379, %v999_v55  }
  0x59   : > { %1018 = vperm.xlu1 %1380, %v1000_v56  }
  0x5c   : > { %1121 = vperm.xlu0 %1379, %v1115_v57  }
  0x5d   : > { %1126 = vperm.xlu1 %1380, %v1116_v58  }
  0x5f   : > { %1321 = vmatmul.mubr.msk.bf16.gmra.mrb[24].mxu0 %vm534_vm0, %v1387_v54 }
  0x60   : > { %661 = vmatprep.mubr.bf16.mxu0 %v1467_v9  ;;  %1131 = vperm.xlu0 %1379, %v1117_v60  }
  0x61   : > { %1136 = vperm.xlu1 %1380, %v1118_v61  }
  0x64   : > { %1168 = vperm.xlu0 %1379, %v1165_v62  }
  0x67   : > { %1322 = vmatmul.mubr.msk.bf16.gmra.mrb[28].mxu0 %vm534_vm0, %v1388_v59 }
  0xa3   : > { %v417_v63 = vpop.permute.xlu0 %416  ;;  %v427_v10 = vpop.permute.xlu1 %426 }
  0xa7   : > { %v422_v3 = vpop.permute.xlu0 %421 }
  0xa8   : > { %v432_v24 = vpop.permute.xlu1 %431 }
  0xab   : > { %v437_v36 = vpop.permute.xlu0 %436 }
  0xac   : > { %v442_v44 = vpop.permute.xlu1 %441 }
  0xaf   : > { %v447_v56 = vpop.permute.xlu0 %446 }
 0x102   : > { %v593_v0 = vpop.f32.mrb[0].mxu0 }
 0x103   : > { %v594_v1 = vadd.f32 %v593_v0, %v417_v63  ;;  %v595_v2 = vpop.f32.mrb[1].mxu0  ;;  %v452_v0 = vpop.permute.xlu1 %451 }
 0x104   : > { %v596_v4 = vadd.f32 %v595_v2, %v417_v63  ;;  %v597_v5 = vpop.f32.mrb[2].mxu0 }
 0x105   : > { %v704_v6 = vmul.f32 0.01, %v594_v1  ;;  %v598_v7 = vadd.f32 %v597_v5, %v422_v3  ;;  %v599_v8 = vpop.f32.mrb[3].mxu0  ;;  %vm672_vm1 = vcmp.ge.f32.partialorder %v594_v1, 0.0 }
 0x106   : > { %v705_v11 = vmul.f32 0.01, %v596_v4  ;;  %v600_v12 = vadd.f32 %v599_v8, %v422_v3  ;;  %vm673_vm2 = vcmp.ge.f32.partialorder %v596_v4, 0.0 }
 0x107   : > { %v706_v13 = vmul.f32 0.01, %v598_v7  ;;  %vm674_vm3 = vcmp.ge.f32.partialorder %v598_v7, 0.0  ;;  %v736_v15 = vsel %vm672_vm1, %v594_v1, %v704_v6 }
 0x108   : > { %v707_v14 = vmul.f32 0.01, %v600_v12  ;;  %vm675_vm4 = vcmp.ge.f32.partialorder %v600_v12, 0.0  ;;  %v737_v18 = vsel %vm673_vm2, %v596_v4, %v705_v11 }
 0x109   : > { %v738_v16 = vsel %vm674_vm3, %v598_v7, %v706_v13  ;;  %v457_v13 = vpop.permute.xlu0 %456 }
 0x10a   : > { %v603_v17 = vpop.f32.mrb[4].mxu0  ;;  %v739_v19 = vsel %vm675_vm4, %v600_v12, %v707_v14  ;;  %v776_v20 = vpack.c.bf16 %v738_v16, %v736_v15 }
 0x10b   : > { %v604_v21 = vadd.f32 %v603_v17, %v427_v10  ;;  %v605_v22 = vpop.f32.mrb[5].mxu0  ;;  %v777_v23 = vpack.c.bf16 %v739_v19, %v737_v18 }
 0x10c   : > { %v606_v25 = vadd.f32 %v605_v22, %v427_v10  ;;  %v607_v26 = vpop.f32.mrb[6].mxu0 }
 0x10d   : > { %v708_v27 = vmul.f32 0.01, %v604_v21  ;;  %v608_v28 = vadd.f32 %v607_v26, %v432_v24  ;;  %v609_v29 = vpop.f32.mrb[7].mxu0  ;;  %864 = vmatprep.subr.bf16.mxu1 %v777_v23  ;;  %vm676_vm5 = vcmp.ge.f32.partialorder %v604_v21, 0.0 }
 0x10e   : > { %v709_v30 = vmul.f32 0.01, %v606_v25  ;;  %v610_v31 = vadd.f32 %v609_v29, %v432_v24  ;;  %865 = vmatpush1.bf16.msra.mxu1 %v776_v20  ;;  %vm677_vm6 = vcmp.ge.f32.partialorder %v606_v25, 0.0 }
 0x10f   : > { %vm678_vm7 = vcmp.ge.f32.partialorder %v608_v28, 0.0  ;;  %v710_v32 = vmul.f32 0.01, %v608_v28  ;;  %v740_v34 = vsel %vm676_vm5, %v604_v21, %v708_v27  ;;  %v462_v21 = vpop.permute.xlu1 %461 }
 0x110   : > { %vm679_vm8 = vcmp.ge.f32.partialorder %v610_v31, 0.0  ;;  %v711_v33 = vmul.f32 0.01, %v610_v31  ;;  %v741_v38 = vsel %vm677_vm6, %v606_v25, %v709_v30 }
 0x111   : > { %v742_v35 = vsel %vm678_vm7, %v608_v28, %v710_v32 }
 0x112   : > { %v613_v37 = vpop.f32.mrb[8].mxu0  ;;  %v743_v39 = vsel %vm679_vm8, %v610_v31, %v711_v33  ;;  %v778_v40 = vpack.c.bf16 %v742_v35, %v740_v34  ;;  %v467_v33 = vpop.permute.xlu0 %466 }
 0x113   : > { %v614_v41 = vadd.f32 %v613_v37, %v437_v36  ;;  %v615_v42 = vpop.f32.mrb[9].mxu0  ;;  %v779_v43 = vpack.c.bf16 %v743_v39, %v741_v38 }
 0x114   : > { %v616_v45 = vadd.f32 %v615_v42, %v437_v36  ;;  %v617_v46 = vpop.f32.mrb[10].mxu0 }
 0x115   : > { %v712_v47 = vmul.f32 0.01, %v614_v41  ;;  %v618_v48 = vadd.f32 %v617_v46, %v442_v44  ;;  %v619_v49 = vpop.f32.mrb[11].mxu0  ;;  %866 = vmatprep.subr.bf16.mxu1 %v779_v43  ;;  %vm680_vm9 = vcmp.ge.f32.partialorder %v614_v41, 0.0 }
 0x116   : > { %v713_v50 = vmul.f32 0.01, %v616_v45  ;;  %v620_v51 = vadd.f32 %v619_v49, %v442_v44  ;;  %867 = vmatpush1.bf16.msra.mxu1 %v778_v40  ;;  %vm681_vm10 = vcmp.ge.f32.partialorder %v616_v45, 0.0 }
 0x117   : > { %vm682_vm11 = vcmp.ge.f32.partialorder %v618_v48, 0.0  ;;  %v714_v52 = vmul.f32 0.01, %v618_v48  ;;  %v744_v54 = vsel %vm680_vm9, %v614_v41, %v712_v47  ;;  %v472_v41 = vpop.permute.xlu1 %471 }
 0x118   : > { %vm683_vm12 = vcmp.ge.f32.partialorder %v620_v51, 0.0  ;;  %v715_v53 = vmul.f32 0.01, %v620_v51  ;;  %v745_v58 = vsel %vm681_vm10, %v616_v45, %v713_v50 }
 0x119   : > { %v746_v55 = vsel %vm682_vm11, %v618_v48, %v714_v52 }
 0x11a   : > { %v623_v57 = vpop.f32.mrb[12].mxu0  ;;  %v747_v59 = vsel %vm683_vm12, %v620_v51, %v715_v53  ;;  %v780_v60 = vpack.c.bf16 %v746_v55, %v744_v54  ;;  %v477_v53 = vpop.permute.xlu0 %476 }
 0x11b   : > { %v624_v61 = vadd.f32 %v623_v57, %v447_v56  ;;  %v625_v62 = vpop.f32.mrb[13].mxu0  ;;  %v781_v63 = vpack.c.bf16 %v747_v59, %v745_v58 }
 0x11c   : > { %v626_v1 = vadd.f32 %v625_v62, %v447_v56  ;;  %v627_v2 = vpop.f32.mrb[14].mxu0 }
 0x11d   : > { %v716_v3 = vmul.f32 0.01, %v624_v61  ;;  %v628_v4 = vadd.f32 %v627_v2, %v452_v0  ;;  %v629_v5 = vpop.f32.mrb[15].mxu0  ;;  %868 = vmatprep.subr.bf16.mxu1 %v781_v63  ;;  %vm684_vm13 = vcmp.ge.f32.partialorder %v624_v61, 0.0 }
 0x11e   : > { %v717_v6 = vmul.f32 0.01, %v626_v1  ;;  %v630_v7 = vadd.f32 %v629_v5, %v452_v0  ;;  %869 = vmatpush1.bf16.msra.mxu1 %v780_v60  ;;  %vm685_vm14 = vcmp.ge.f32.partialorder %v626_v1, 0.0 }
 0x11f   : > { %vm686_vm15 = vcmp.ge.f32.partialorder %v628_v4, 0.0  ;;  %v718_v8 = vmul.f32 0.01, %v628_v4  ;;  %v748_v11 = vsel %vm684_vm13, %v624_v61, %v716_v3  ;;  %v482_v61 = vpop.permute.xlu1 %481 }
 0x120   : > { %vm687_vm0 = vcmp.ge.f32.partialorder %v630_v7, 0.0  ;;  %v719_v10 = vmul.f32 0.01, %v630_v7  ;;  %v749_v15 = vsel %vm685_vm14, %v626_v1, %v717_v6 }
 0x121   : > { %v750_v12 = vsel %vm686_vm15, %v628_v4, %v718_v8 }
 0x122   : > { %v633_v14 = vpop.f32.mrb[16].mxu0  ;;  %v751_v16 = vsel %vm687_vm0, %v630_v7, %v719_v10  ;;  %v782_v17 = vpack.c.bf16 %v750_v12, %v748_v11  ;;  %v487_v10 = vpop.permute.xlu0 %486 }
 0x123   : > { %v634_v18 = vadd.f32 %v633_v14, %v457_v13  ;;  %v635_v19 = vpop.f32.mrb[17].mxu0  ;;  %v783_v20 = vpack.c.bf16 %v751_v16, %v749_v15 }
 0x124   : > { %v636_v22 = vadd.f32 %v635_v19, %v457_v13  ;;  %v637_v23 = vpop.f32.mrb[18].mxu0 }
 0x125   : > { %v720_v24 = vmul.f32 0.01, %v634_v18  ;;  %v638_v25 = vadd.f32 %v637_v23, %v462_v21  ;;  %v639_v26 = vpop.f32.mrb[19].mxu0  ;;  %870 = vmatprep.subr.bf16.mxu1 %v783_v20  ;;  %vm688_vm1 = vcmp.ge.f32.partialorder %v634_v18, 0.0 }
 0x126   : > { %v721_v27 = vmul.f32 0.01, %v636_v22  ;;  %v640_v28 = vadd.f32 %v639_v26, %v462_v21  ;;  %871 = vmatpush1.bf16.msra.mxu1 %v782_v17  ;;  %vm689_vm2 = vcmp.ge.f32.partialorder %v636_v22, 0.0 }
 0x127   : > { %vm690_vm3 = vcmp.ge.f32.partialorder %v638_v25, 0.0  ;;  %v722_v29 = vmul.f32 0.01, %v638_v25  ;;  %v752_v31 = vsel %vm688_vm1, %v634_v18, %v720_v24  ;;  %v492_v18 = vpop.permute.xlu1 %491 }
 0x128   : > { %vm691_vm4 = vcmp.ge.f32.partialorder %v640_v28, 0.0  ;;  %v723_v30 = vmul.f32 0.01, %v640_v28  ;;  %v753_v35 = vsel %vm689_vm2, %v636_v22, %v721_v27 }
 0x129   : > { %v754_v32 = vsel %vm690_vm3, %v638_v25, %v722_v29 }
 0x12a   : > { %v643_v34 = vpop.f32.mrb[20].mxu0  ;;  %v755_v36 = vsel %vm691_vm4, %v640_v28, %v723_v30  ;;  %v784_v37 = vpack.c.bf16 %v754_v32, %v752_v31 }
 0x12b   : > { %v644_v38 = vadd.f32 %v643_v34, %v467_v33  ;;  %v645_v39 = vpop.f32.mrb[21].mxu0  ;;  %v785_v40 = vpack.c.bf16 %v755_v36, %v753_v35  ;;  %v1389_v34 = vld [vmem:[%s1798_s3] sm:$0xff]   ;;  %v1390_v35 = vld [vmem:[%s1798_s3 + $0x8] sm:$0xff]   ;;  %v1391_v36 = vld [vmem:[%s1798_s3 + $0x10] sm:$0xff]  }
 0x12c   : > { %v646_v42 = vadd.f32 %v645_v39, %v467_v33  ;;  %v647_v43 = vpop.f32.mrb[22].mxu0 }
 0x12d   : > { %v724_v44 = vmul.f32 0.01, %v644_v38  ;;  %v648_v45 = vadd.f32 %v647_v43, %v472_v41  ;;  %v649_v46 = vpop.f32.mrb[23].mxu0  ;;  %872 = vmatprep.subr.bf16.mxu1 %v785_v40  ;;  %vm692_vm5 = vcmp.ge.f32.partialorder %v644_v38, 0.0 }
 0x12e   : > { %v725_v47 = vmul.f32 0.01, %v646_v42  ;;  %v650_v48 = vadd.f32 %v649_v46, %v472_v41  ;;  %873 = vmatpush1.bf16.msra.mxu1 %v784_v37  ;;  %vm693_vm6 = vcmp.ge.f32.partialorder %v646_v42, 0.0  ;;  %v1392_v37 = vld [vmem:[%s1798_s3 + $0x18] sm:$0xff]  }
 0x12f   : > { %vm694_vm7 = vcmp.ge.f32.partialorder %v648_v45, 0.0  ;;  %v726_v49 = vmul.f32 0.01, %v648_v45  ;;  %v756_v51 = vsel %vm692_vm5, %v644_v38, %v724_v44  ;;  %v803_v38 = vpop.permute.xlu0 %802 }
 0x130   : > { %vm695_vm8 = vcmp.ge.f32.partialorder %v650_v48, 0.0  ;;  %v727_v50 = vmul.f32 0.01, %v650_v48  ;;  %v757_v55 = vsel %vm693_vm6, %v646_v42, %v725_v47  ;;  %v808_v42 = vpop.permute.xlu1 %807 }
 0x131   : > { %v758_v52 = vsel %vm694_vm7, %v648_v45, %v726_v49 }
 0x132   : > { %v653_v54 = vpop.f32.mrb[24].mxu0  ;;  %v759_v56 = vsel %vm695_vm8, %v650_v48, %v727_v50  ;;  %v786_v57 = vpack.c.bf16 %v758_v52, %v756_v51 }
 0x133   : > { %v654_v58 = vadd.f32 %v653_v54, %v477_v53  ;;  %v655_v59 = vpop.f32.mrb[25].mxu0  ;;  %v787_v60 = vpack.c.bf16 %v759_v56, %v757_v55  ;;  %v813_v54 = vpop.permute.xlu0 %812 }
 0x134   : > { %v656_v62 = vadd.f32 %v655_v59, %v477_v53  ;;  %v657_v63 = vpop.f32.mrb[26].mxu0 }
 0x135   : > { %v728_v0 = vmul.f32 0.01, %v654_v58  ;;  %v658_v1 = vadd.f32 %v657_v63, %v482_v61  ;;  %v659_v2 = vpop.f32.mrb[27].mxu0  ;;  %874 = vmatprep.subr.bf16.mxu1 %v787_v60  ;;  %vm696_vm9 = vcmp.ge.f32.partialorder %v654_v58, 0.0 }
 0x136   : > { %v729_v3 = vmul.f32 0.01, %v656_v62  ;;  %v660_v4 = vadd.f32 %v659_v2, %v482_v61  ;;  %875 = vmatpush1.bf16.msra.mxu1 %v786_v57  ;;  %vm697_vm10 = vcmp.ge.f32.partialorder %v656_v62, 0.0 }
 0x137   : > { %vm698_vm11 = vcmp.ge.f32.partialorder %v658_v1, 0.0  ;;  %v730_v5 = vmul.f32 0.01, %v658_v1  ;;  %v760_v7 = vsel %vm696_vm9, %v654_v58, %v728_v0 }
 0x138   : > { %vm699_vm12 = vcmp.ge.f32.partialorder %v660_v4, 0.0  ;;  %v731_v6 = vmul.f32 0.01, %v660_v4  ;;  %v761_v12 = vsel %vm697_vm10, %v656_v62, %v729_v3  ;;  %v818_v62 = vpop.permute.xlu1 %817 }
 0x139   : > { %v762_v8 = vsel %vm698_vm11, %v658_v1, %v730_v5 }
 0x13a   : > { %v663_v11 = vpop.f32.mrb[28].mxu0  ;;  %v763_v13 = vsel %vm699_vm12, %v660_v4, %v731_v6  ;;  %v788_v14 = vpack.c.bf16 %v762_v8, %v760_v7 }
 0x13b   : > { %v664_v15 = vadd.f32 %v663_v11, %v487_v10  ;;  %v665_v16 = vpop.f32.mrb[29].mxu0  ;;  %v789_v17 = vpack.c.bf16 %v763_v13, %v761_v12  ;;  %v823_v11 = vpop.permute.xlu0 %822 }
 0x13c   : > { %v666_v19 = vadd.f32 %v665_v16, %v487_v10  ;;  %v667_v20 = vpop.f32.mrb[30].mxu0 }
 0x13d   : > { %v732_v21 = vmul.f32 0.01, %v664_v15  ;;  %v668_v22 = vadd.f32 %v667_v20, %v492_v18  ;;  %v669_v23 = vpop.f32.mrb[31].mxu0  ;;  %876 = vmatprep.subr.bf16.mxu1 %v789_v17  ;;  %vm700_vm13 = vcmp.ge.f32.partialorder %v664_v15, 0.0 }
 0x13e   : > { %v733_v24 = vmul.f32 0.01, %v666_v19  ;;  %v670_v25 = vadd.f32 %v669_v23, %v492_v18  ;;  %877 = vmatpush1.bf16.msra.mxu1 %v788_v14  ;;  %vm701_vm14 = vcmp.ge.f32.partialorder %v666_v19, 0.0 }
 0x13f   : > { %vm702_vm15 = vcmp.ge.f32.partialorder %v668_v22, 0.0  ;;  %v734_v26 = vmul.f32 0.01, %v668_v22  ;;  %v764_v28 = vsel %vm700_vm13, %v664_v15, %v732_v21 }
 0x140   : > { %vm703_vm0 = vcmp.ge.f32.partialorder %v670_v25, 0.0  ;;  %v735_v27 = vmul.f32 0.01, %v670_v25  ;;  %v765_v30 = vsel %vm701_vm14, %v666_v19, %v733_v24  ;;  %v828_v19 = vpop.permute.xlu1 %827 }
 0x141   : > { %v766_v29 = vsel %vm702_vm15, %v668_v22, %v734_v26 }
 0x142   : > { %v767_v31 = vsel %vm703_vm0, %v670_v25, %v735_v27  ;;  %v790_v32 = vpack.c.bf16 %v766_v29, %v764_v28 }
 0x143   : > { %v791_v33 = vpack.c.bf16 %v767_v31, %v765_v30  ;;  %v833_v31 = vpop.permute.xlu0 %832 }
 0x145   : > { %878 = vmatprep.subr.bf16.mxu1 %v791_v33 }
 0x146   : > { %879 = vmatpush1.bf16.msra.mxu1 %v790_v32 }
 0x149   : > { %897 = vmatmul.mubr.bf16.vlgmr.msra.gmra.mrb[0].mxu1 %v1389_v34 }
 0x14a   : > { %906 = vmatprep.mubr.bf16.mxu1 %v1467_v9 }
 0x151   : > { %907 = vmatmul.mubr.bf16.gmra.mrb[4].mxu1 %v1390_v35 }
 0x152   : > { %916 = vmatprep.mubr.bf16.mxu1 %v1467_v9 }
 0x159   : > { %917 = vmatmul.mubr.bf16.gmra.mrb[8].mxu1 %v1391_v36 }
 0x15a   : > { %926 = vmatprep.mubr.bf16.mxu1 %v1467_v9 }
 0x161   : > { %927 = vmatmul.mubr.bf16.gmra.mrb[12].mxu1 %v1392_v37 }
 0x162   : > { %1070 = vmatprep.mubr.bf16.mxu1 %v1467_v9 }
 0x21c   : > { %v898_v39 = vpop.f32.mrb[0].mxu1 }
 0x21d   : > { %v899_v40 = vadd.f32 %v898_v39, %v803_v38  ;;  %v900_v41 = vpop.f32.mrb[1].mxu1  ;;  %v838_v39 = vpop.permute.xlu1 %837 }
 0x21e   : > { %v901_v43 = vadd.f32 %v900_v41, %v803_v38  ;;  %v902_v44 = vpop.f32.mrb[2].mxu1 }
 0x21f   : > { %v953_v45 = vmul.f32 0.01, %v899_v40  ;;  %v903_v46 = vadd.f32 %v902_v44, %v808_v42  ;;  %v904_v47 = vpop.f32.mrb[3].mxu1  ;;  %vm937_vm1 = vcmp.ge.f32.partialorder %v899_v40, 0.0 }
 0x220   : > { %v954_v48 = vmul.f32 0.01, %v901_v43  ;;  %v905_v49 = vadd.f32 %v904_v47, %v808_v42  ;;  %vm938_vm2 = vcmp.ge.f32.partialorder %v901_v43, 0.0 }
 0x221   : > { %vm939_vm3 = vcmp.ge.f32.partialorder %v903_v46, 0.0  ;;  %v955_v50 = vmul.f32 0.01, %v903_v46  ;;  %v969_v52 = vsel %vm937_vm1, %v899_v40, %v953_v45  ;;  %vm1031_vm1 = vcmask 523264  }
 0x222   : > { %vm940_vm4 = vcmp.ge.f32.partialorder %v905_v49, 0.0  ;;  %v956_v51 = vmul.f32 0.01, %v905_v49  ;;  %v970_v57 = vsel %vm938_vm2, %v901_v43, %v954_v48 }
 0x223   : > { %v971_v53 = vsel %vm939_vm3, %v903_v46, %v955_v50 }
 0x224   : > { %v989_v55 = vpack.c.bf16 %v971_v53, %v969_v52  ;;  %v908_v56 = vpop.f32.mrb[4].mxu1  ;;  %v972_v58 = vsel %vm940_vm4, %v905_v49, %v956_v51 }
 0x225   : > { %v909_v59 = vadd.f32 %v908_v56, %v813_v54  ;;  %v910_v60 = vpop.f32.mrb[5].mxu1  ;;  %v990_v61 = vpack.c.bf16 %v972_v58, %v970_v57  ;;  %v1394_v56 = vld [vmem:[%s1800_s5 + $0x8] sm:$0xff]   ;;  %v1004_v57 = vpop.permute.xlu0 %1003 }
 0x226   : > { %v911_v63 = vadd.f32 %v910_v60, %v813_v54  ;;  %v912_v0 = vpop.f32.mrb[6].mxu1  ;;  %v1009_v58 = vpop.permute.xlu1 %1008 }
 0x227   : > { %v957_v1 = vmul.f32 0.01, %v909_v59  ;;  %v913_v2 = vadd.f32 %v912_v0, %v818_v62  ;;  %v914_v3 = vpop.f32.mrb[7].mxu1  ;;  %1038 = vmatprep.subr.bf16.mxu1 %v990_v61  ;;  %vm941_vm5 = vcmp.ge.f32.partialorder %v909_v59, 0.0 }
 0x228   : > { %v958_v4 = vmul.f32 0.01, %v911_v63  ;;  %v915_v5 = vadd.f32 %v914_v3, %v818_v62  ;;  %1039 = vmatpush1.bf16.msra.mxu1 %v989_v55  ;;  %vm942_vm6 = vcmp.ge.f32.partialorder %v911_v63, 0.0  ;;  %v1393_v55 = vld [vmem:[%s1800_s5] sm:$0xff]  }
 0x229   : > { %vm943_vm7 = vcmp.ge.f32.partialorder %v913_v2, 0.0  ;;  %v959_v6 = vmul.f32 0.01, %v913_v2  ;;  %v973_v8 = vsel %vm941_vm5, %v909_v59, %v957_v1  ;;  %v1014_v59 = vpop.permute.xlu0 %1013 }
 0x22a   : > { %vm944_vm8 = vcmp.ge.f32.partialorder %v915_v5, 0.0  ;;  %v960_v7 = vmul.f32 0.01, %v915_v5  ;;  %v974_v14 = vsel %vm942_vm6, %v911_v63, %v958_v4  ;;  %v1019_v61 = vpop.permute.xlu1 %1018 }
 0x22b   : > { %v975_v10 = vsel %vm943_vm7, %v913_v2, %v959_v6 }
 0x22c   : > { %v991_v12 = vpack.c.bf16 %v975_v10, %v973_v8  ;;  %v918_v13 = vpop.f32.mrb[8].mxu1  ;;  %v976_v15 = vsel %vm944_vm8, %v915_v5, %v960_v7 }
 0x22d   : > { %v919_v16 = vadd.f32 %v918_v13, %v823_v11  ;;  %v920_v17 = vpop.f32.mrb[9].mxu1  ;;  %v992_v18 = vpack.c.bf16 %v976_v15, %v974_v14 }
 0x22e   : > { %v921_v20 = vadd.f32 %v920_v17, %v823_v11  ;;  %v922_v21 = vpop.f32.mrb[10].mxu1  ;;  %v1122_v11 = vpop.permute.xlu0 %1121 }
 0x22f   : > { %v961_v22 = vmul.f32 0.01, %v919_v16  ;;  %v923_v23 = vadd.f32 %v922_v21, %v828_v19  ;;  %v924_v24 = vpop.f32.mrb[11].mxu1  ;;  %1040 = vmatprep.subr.bf16.mxu1 %v992_v18  ;;  %vm945_vm9 = vcmp.ge.f32.partialorder %v919_v16, 0.0 }
 0x230   : > { %v962_v25 = vmul.f32 0.01, %v921_v20  ;;  %v925_v26 = vadd.f32 %v924_v24, %v828_v19  ;;  %1041 = vmatpush1.bf16.msra.mxu1 %v991_v12  ;;  %vm946_vm10 = vcmp.ge.f32.partialorder %v921_v20, 0.0  ;;  %v1127_v12 = vpop.permute.xlu1 %1126 }
 0x231   : > { %vm947_vm11 = vcmp.ge.f32.partialorder %v923_v23, 0.0  ;;  %v963_v27 = vmul.f32 0.01, %v923_v23  ;;  %v977_v29 = vsel %vm945_vm9, %v919_v16, %v961_v22 }
 0x232   : > { %vm948_vm12 = vcmp.ge.f32.partialorder %v925_v26, 0.0  ;;  %v964_v28 = vmul.f32 0.01, %v925_v26  ;;  %v978_v34 = vsel %vm946_vm10, %v921_v20, %v962_v25 }
 0x233   : > { %v979_v30 = vsel %vm947_vm11, %v923_v23, %v963_v27 }
 0x234   : > { %v993_v32 = vpack.c.bf16 %v979_v30, %v977_v29  ;;  %v928_v33 = vpop.f32.mrb[12].mxu1  ;;  %v980_v35 = vsel %vm948_vm12, %v925_v26, %v964_v28 }
 0x235   : > { %v929_v36 = vadd.f32 %v928_v33, %v833_v31  ;;  %v930_v37 = vpop.f32.mrb[13].mxu1  ;;  %v994_v38 = vpack.c.bf16 %v980_v35, %v978_v34 }
 0x236   : > { %v931_v40 = vadd.f32 %v930_v37, %v833_v31  ;;  %v932_v41 = vpop.f32.mrb[14].mxu1  ;;  %v1132_v31 = vpop.permute.xlu0 %1131 }
 0x237   : > { %v965_v42 = vmul.f32 0.01, %v929_v36  ;;  %v933_v43 = vadd.f32 %v932_v41, %v838_v39  ;;  %v934_v44 = vpop.f32.mrb[15].mxu1  ;;  %1042 = vmatprep.subr.bf16.mxu1 %v994_v38  ;;  %vm949_vm13 = vcmp.ge.f32.partialorder %v929_v36, 0.0  ;;  %v1137_v37 = vpop.permute.xlu1 %1136 }
 0x238   : > { %v966_v45 = vmul.f32 0.01, %v931_v40  ;;  %v935_v46 = vadd.f32 %v934_v44, %v838_v39  ;;  %1043 = vmatpush1.bf16.msra.mxu1 %v993_v32  ;;  %vm950_vm14 = vcmp.ge.f32.partialorder %v931_v40, 0.0 }
 0x239   : > { %vm951_vm15 = vcmp.ge.f32.partialorder %v933_v43, 0.0  ;;  %v967_v47 = vmul.f32 0.01, %v933_v43  ;;  %v981_v49 = vsel %vm949_vm13, %v929_v36, %v965_v42 }
 0x23a   : > { %vm952_vm0 = vcmp.ge.f32.partialorder %v935_v46, 0.0  ;;  %v968_v48 = vmul.f32 0.01, %v935_v46  ;;  %v982_v52 = vsel %vm950_vm14, %v931_v40, %v966_v45  ;;  %v1171_v45 = vlaneseq }
 0x23b   : > { %v983_v50 = vsel %vm951_vm15, %v933_v43, %v967_v47 }
 0x23c   : > { %v995_v51 = vpack.c.bf16 %v983_v50, %v981_v49  ;;  %v984_v53 = vsel %vm952_vm0, %v935_v46, %v968_v48  ;;  %v1172_v50 = vshrl.u32 %v1171_v45, 7  ;;  %vm1215_vm12 = vcmp.lt.s32.totalorder %v1171_v45, 256 }
 0x23d   : > { %v996_v54 = vpack.c.bf16 %v984_v53, %v982_v52 }
 0x23f   : > { %1044 = vmatprep.subr.bf16.mxu1 %v996_v54 }
 0x240   : > { %1045 = vmatpush1.bf16.msra.mxu1 %v995_v51 }
 0x243   : > { %1329 = vmatmul.mubr.msk.bf16.vlgmr.msra.gmra.mrb[16].mxu1 %vm1031_vm1, %v1393_v55  ;;  %v1173_v55 = vsub.s32 0, %v1172_v50 }
 0x244   : > { %1080 = vmatprep.mubr.bf16.mxu1 %v1467_v9 }
 0x24b   : > { %1330 = vmatmul.mubr.msk.bf16.gmra.mrb[20].mxu1 %vm1031_vm1, %v1394_v56 }
 0x316   : > { %v1072_v60 = vpop.f32.mrb[16].mxu1 }
 0x317   : > { %v1073_v62 = vadd.f32 %v1072_v60, %v1004_v57  ;;  %v1074_v63 = vpop.f32.mrb[17].mxu1 }
 0x318   : > { %v1075_v0 = vadd.f32 %v1074_v63, %v1004_v57  ;;  %v1076_v1 = vpop.f32.mrb[18].mxu1  ;;  %v1169_v57 = vpop.permute.xlu0 %1168 }
 0x319   : > { %vm1091_vm2 = vcmp.ge.f32.partialorder %v1073_v62, 0.0  ;;  %v1099_v2 = vmul.f32 0.01, %v1073_v62  ;;  %v1077_v3 = vadd.f32 %v1076_v1, %v1009_v58  ;;  %v1078_v4 = vpop.f32.mrb[19].mxu1 }
 0x31a   : > { %vm1092_vm3 = vcmp.ge.f32.partialorder %v1075_v0, 0.0  ;;  %v1100_v9 = vmul.f32 0.01, %v1075_v0  ;;  %v1079_v5 = vadd.f32 %v1078_v4, %v1009_v58 }
 0x31b   : > { %v1107_v6 = vsel %vm1091_vm2, %v1073_v62, %v1099_v2  ;;  %vm1093_vm4 = vcmp.ge.f32.partialorder %v1077_v3, 0.0  ;;  %v1101_v7 = vmul.f32 0.01, %v1077_v3 }
 0x31c   : > { %v1108_v8 = vsel %vm1092_vm3, %v1075_v0, %v1100_v9  ;;  %vm1094_vm5 = vcmp.ge.f32.partialorder %v1079_v5, 0.0  ;;  %v1102_v10 = vmul.f32 0.01, %v1079_v5  ;;  %v1139_v14 = vmul.f32 %v1122_v11, %v1107_v6 }
 0x31d   : > { %v1109_v13 = vsel %vm1093_vm4, %v1077_v3, %v1101_v7  ;;  %v1140_v18 = vmul.f32 %v1122_v11, %v1108_v8 }
 0x31e   : > { %v1141_v15 = vmul.f32 %v1127_v12, %v1109_v13  ;;  %v1110_v16 = vsel %vm1094_vm5, %v1079_v5, %v1102_v10  ;;  %v1082_v17 = vpop.f32.mrb[20].mxu1 }
 0x31f   : > { %v1142_v19 = vmul.f32 %v1127_v12, %v1110_v16  ;;  %v1083_v20 = vadd.f32 %v1082_v17, %v1014_v59  ;;  %v1084_v21 = vpop.f32.mrb[21].mxu1  ;;  %v1468_v12 = vmov 1966171168  }
 0x320   : > { %v1147_v22 = vadd.f32 %v1141_v15, %v1139_v14  ;;  %v1085_v23 = vadd.f32 %v1084_v21, %v1014_v59  ;;  %v1086_v24 = vpop.f32.mrb[22].mxu1  ;;  %v1199_v13 = vunpack.c.l.s4 %v1468_v12 }
 0x321   : > { %v1156_v25 = vadd.f32 %v1142_v19, %v1140_v18  ;;  %vm1095_vm6 = vcmp.ge.f32.partialorder %v1083_v20, 0.0  ;;  %v1103_v26 = vmul.f32 0.01, %v1083_v20  ;;  %v1087_v27 = vadd.f32 %v1086_v24, %v1019_v61  ;;  %v1088_v28 = vpop.f32.mrb[23].mxu1 }
 0x322   : > { %vm1096_vm7 = vcmp.ge.f32.partialorder %v1085_v23, 0.0  ;;  %v1104_v29 = vmul.f32 0.01, %v1085_v23  ;;  %v1089_v30 = vadd.f32 %v1088_v28, %v1019_v61  ;;  %v1174_v61 = vrot.slane %v1169_v57, %v1173_v55 }
 0x323   : > { %v1111_v32 = vsel %vm1095_vm6, %v1083_v20, %v1103_v26  ;;  %vm1097_vm8 = vcmp.ge.f32.partialorder %v1087_v27, 0.0  ;;  %v1105_v33 = vmul.f32 0.01, %v1087_v27  ;;  %v1200_v14 = vunpack.c.0.s8 %v1199_v13 }
 0x324   : > { %v1143_v34 = vmul.f32 %v1132_v31, %v1111_v32  ;;  %v1112_v35 = vsel %vm1096_vm7, %v1085_v23, %v1104_v29  ;;  %vm1098_vm9 = vcmp.ge.f32.partialorder %v1089_v30, 0.0  ;;  %v1106_v36 = vmul.f32 0.01, %v1089_v30 }
 0x325   : > { %v1144_v38 = vmul.f32 %v1132_v31, %v1112_v35  ;;  %v1113_v39 = vsel %vm1097_vm8, %v1087_v27, %v1105_v33  ;;  %v1203_v20 = vsub.s32 %v1200_v14, %v1172_v50 }
 0x326   : > { %v1148_v40 = vadd.f32 %v1147_v22, %v1143_v34  ;;  %v1145_v41 = vmul.f32 %v1137_v37, %v1113_v39  ;;  %v1114_v42 = vsel %vm1098_vm9, %v1089_v30, %v1106_v36 }
 0x327   : > { %v1157_v43 = vadd.f32 %v1156_v25, %v1144_v38  ;;  %v1146_v44 = vmul.f32 %v1137_v37, %v1114_v42 }
 0x328   : > { %v1149_v46 = vadd.f32 %v1148_v40, %v1145_v41 }
 0x329   : > { %v1158_v47 = vadd.f32 %v1157_v43, %v1146_v44 }
 0x32a   : > { %v1150_v48 = vrot.slane %v1149_v46, 4 }
 0x32b   : > { %v1159_v49 = vrot.slane %v1158_v47, 4 }
 0x32c   : > { %v1151_v51 = vadd.f32 %v1150_v48, %v1149_v46 }
 0x32d   : > { %v1160_v52 = vadd.f32 %v1159_v49, %v1158_v47 }
 0x32e   : > { %v1152_v53 = vrot.slane %v1151_v51, 2 }
 0x32f   : > { %v1161_v54 = vrot.slane %v1160_v52, 2 }
 0x330   : > { %v1153_v56 = vadd.f32 %v1152_v53, %v1151_v51 }
 0x331   : > { %v1162_v58 = vadd.f32 %v1161_v54, %v1160_v52 }
 0x332   : > { %v1154_v59 = vrot.slane %v1153_v56, 1 }
 0x333   : > { %v1163_v60 = vrot.slane %v1162_v58, 1 }
 0x334   : > { %v1155_v62 = vadd.f32 %v1154_v59, %v1153_v56 }
 0x335   : > { %v1164_v63 = vadd.f32 %v1163_v60, %v1162_v58 }
 0x336   : > { %v1175_v0 = vadd.f32 %v1174_v61, %v1155_v62 }
 0x337   : > { %v1176_v1 = vadd.f32 %v1174_v61, %v1164_v63 }
 0x338   : > { %v1177_v2 = vand.u32 2147483647, %v1175_v0  ;;  %vm1185_vm10 = vcmp.ge.f32.partialorder %v1175_v0, 0.0 }
 0x339   : > { %v1178_v3 = vand.u32 2147483647, %v1176_v1  ;;  %vm1186_vm11 = vcmp.ge.f32.partialorder %v1176_v1, 0.0 }
 0x33a   : > { %v1179_v4 = vsub.f32 0.0, %v1177_v2 }
 0x33b   : > { %v1180_v9 = vsub.f32 0.0, %v1178_v3 }
 0x33c   : > { %v1181_v5 = vmul.f32 1.442695, %v1179_v4 }
 0x33d   : > { %v1183_v6 = vmul.f32 1.442695, %v1180_v9 }
 0x33e   : > { %1395 = vpow2.f32 %v1181_v5 }
 0x33f   : > { %1397 = vpow2.f32 %v1183_v6 }
 0x348   : > { %v1396_v7 = vpop.eup %1395 }
 0x349   : > { %v1398_v8 = vpop.eup %1397  ;;  %v1189_v10 = vadd.f32 1.0, %v1396_v7  ;;  %v1187_v16 = vsel %vm1185_vm10, 1.0, %v1396_v7 }
 0x34a   : > { %v1190_v11 = vadd.f32 1.0, %v1398_v8  ;;  %v1188_v18 = vsel %vm1186_vm11, 1.0, %v1398_v8 }
 0x34b   : > { %1399 = vrcp.f32 %v1189_v10 }
 0x34c   : > { %1401 = vrcp.f32 %v1190_v11 }
 0x355   : > { %v1400_v15 = vpop.eup %1399 }
 0x356   : > { %v1402_v17 = vpop.eup %1401  ;;  %v1192_v19 = vmul.f32 %v1400_v15, %v1187_v16 }
 0x357   : > { %v1194_v21 = vmul.f32 %v1402_v17, %v1188_v18 }
 0x359   : > { %v1197_v22 = vcombine.low %v1192_v19, %v1194_v21 }
 0x35b   : > { %v1204_v23 = vrot.slane %v1197_v22, %v1203_v20 }
 0x35d   : > { %v1211_v24 = vrot.slane %v1204_v23, %v1203_v20 }
 0x35f   : > { %1217 = vst.msk [vmem:[%s366_s30] sm:$0x3] %vm1215_vm12, %v1211_v24 }
 0x360   : > { %1416 = shalt.err (!%p1413_p5)
}
 0x361   : > { %s1417_s29 = scalar_lea.hbm %s1751_s18, 32  ;;  %s1421_s28 = scalar_lea.hbm %s1804_s9, 64 }
 0x362   : > { %p1418_p7 = scmp.ne.s32.totalorder %s1751_s18, %s1417_s29  ;;  %p1422_p12 = scmp.lt.u32.totalorder %s1751_s18, %s1804_s9 }
 0x363   : > { %p1423_p13 = scmp.lt.u32.totalorder %s1421_s28, %s1417_s29  ;;  %p1425_p1 = scmp.lt.u32.totalorder %s1417_s29, %s1751_s18 }
 0x364   : > { %p1419_p10 = pnand %p1418_p7, %p1561_p6 }
 0x365   : > { %p1424_p0 = por %p1423_p13, %p1422_p12 }
 0x366   : > { %p1420_p11 = pneg %p1419_p10 }
 0x367   : > { %p1426_p2 = por %p1425_p1, %p1424_p0 }
 0x369   : > { %p1427_p3 = pnand %p1426_p2, %p1420_p11 }
 0x36b   : > { %1430 = shalt.err (!%p1427_p3)
}
 0x36c   : > { %1338 = dma.vmem_to_hbm [thread:$0]  (%p1561_p6), %s1753_s10, 32, %s1751_s18, %s1219_s22  }
 0x36d PF: > { %s1245_s17 = sand.u32 1, %s1453_s11   ;;  %p1341_p4 = pnand %p1300_p9, %p1565_p8 }
 0x36e   : > { %s1246_s23 = scalar_lea.sflag [#allocation5], %s1245_s17 }
 0x36f   : > { %1448 = dma.done.wait (!%p1341_p4), %s1246_s23, 32  }
 0x370   : > { %1450 = vsyncadd (!%p1341_p4), %s1246_s23, 4294967264  ;;  %p21_p5 = scmp.ge.s32.totalorder %s1546_s16, 4   ;;  %s1807_s11 = smov %s1457_s12 }
 0x371   : > { %s1808_s12 = smov %s1461_s13  ;;  %s1809_s13 = smov %s1559_s19 }
 0x372   : > { %s1810_s14 = smov %s1546_s16  ;;  %23 = sbr.rel (!%p21_p5) target bundleno = 6 (0x6), region = 119 }
 0x379   :  { %1251 = vsyncpa [#allocation5], 1 }
 0x37a   :  { %1253 = vsyncpa [#allocation5 + $0x1], 1 }

</bundles_post_ra>
